<compile_context>
chip_gen: v7x
topology: tpu7x:2x2x1
jax: 0.10.0
libtpu: 0.0.40
codegen_flags: <defaults>
</compile_context>

<pallas_src>
import functools

import jax
import jax.numpy as jnp
from jax import lax
from jax.experimental import pallas as pl
from jax.experimental.pallas import tpu as pltpu


def _round_up(x, m):
    return ((x + m - 1) // m) * m


# ----------------------------------------------------------------------------
# Text branch (runs once): EOT embed -> projection -> L2 norm, pre-transposed
# ----------------------------------------------------------------------------

def _text_features_kernel(sfx_ref, pos_ref, wtxt_ref, o_ref):
    # EOT token = last suffix token + last positional-embedding row (f32 VPU).
    eot = sfx_ref[...].astype(jnp.float32) + pos_ref[...].astype(jnp.float32)
    txt = jnp.dot(eot.astype(jnp.bfloat16), wtxt_ref[...],
                  preferred_element_type=jnp.float32)           # [n_cls_pad, D]
    inv = lax.rsqrt(jnp.sum(txt * txt, axis=-1, keepdims=True) + 1e-30)
    txt_n = (txt * inv).astype(jnp.bfloat16)                    # [n_cls_pad, D]
    # One-time transpose so the hot loop's logits matmul is a plain (k)
    # contraction with a lane-dense [*, n_cls_pad] output.
    o_ref[...] = txt_n.T                                        # [D, n_cls_pad]


def text_features_transposed(suffix_last, pos_last, w_txt, n_cls_pad):
    """suffix_last [n_cls, dm] bf16, pos_last [1, dm] bf16, w_txt [dm, D] bf16
    -> normalized text features, transposed & lane-padded: [D, n_cls_pad] bf16."""
    n_cls, dm = suffix_last.shape
    d = w_txt.shape[1]
    sfx = suffix_last
    if n_cls_pad > n_cls:
        sfx = jnp.pad(suffix_last, ((0, n_cls_pad - n_cls), (0, 0)))
    return pl.pallas_call(
        _text_features_kernel,
        out_shape=jax.ShapeDtypeStruct((d, n_cls_pad), jnp.bfloat16),
        grid=(1,),
        in_specs=[
            pl.BlockSpec((n_cls_pad, dm), lambda i: (0, 0)),    # suffix EOT tokens
            pl.BlockSpec((1, dm), lambda i: (0, 0)),            # pos emb (EOT slot)
            pl.BlockSpec((dm, d), lambda i: (0, 0)),            # text projection
        ],
        out_specs=pl.BlockSpec((d, n_cls_pad), lambda i: (0, 0)),
    )(sfx, pos_last, w_txt)


# ----------------------------------------------------------------------------
# Image head: K-tiled image projection -> normalize/scale -> logits
# ----------------------------------------------------------------------------

def _image_logits_kernel(scale_ref, x_ref, wimg_ref, txt_ref, o_ref, acc_ref):
    k = pl.program_id(1)

    @pl.when(k == 0)
    def _init():
        acc_ref[...] = jnp.zeros_like(acc_ref)

    # image_encoder stem: stream a (tb, tk) f32 image tile, cast to bf16 on the
    # way into the MXU, accumulate in the persistent f32 VMEM scratch.
    acc_ref[...] += jnp.dot(x_ref[...].astype(jnp.bfloat16), wimg_ref[...],
                            preferred_element_type=jnp.float32)

    @pl.when(k == pl.num_programs(1) - 1)
    def _finalize():
        img = acc_ref[...]                                      # [tb, D] f32
        # L2 norm via rsqrt (EUP slot); exp(logit_scale) is pre-folded into
        # `scale`, so no extra VPU pass over the output tile.
        inv = lax.rsqrt(jnp.sum(img * img, axis=-1, keepdims=True) + 1e-30)
        img_n = (img * (inv * scale_ref[0])).astype(jnp.bfloat16)
        # logits = (scale * img_n) @ txt_n^T ; txt arrives pre-transposed
        # [D, n_cls_pad]: plain contraction, bf16 MXU feed, lane-dense store.
        o_ref[...] = jnp.dot(img_n, txt_ref[...],
                             preferred_element_type=jnp.float32)


def fused_clip_head(scale, x_flat, w_img, txt_nT, *, tb=256, tk=2048,
                    w_img_buffers=2, vmem_limit_bytes=None):
    """scale f32[1] (= exp(logit_scale)), x_flat f32[B, K], w_img bf16[K, D],
    txt_nT bf16[D, n_cls_pad] -> padded logits f32[B_pad, n_cls_pad]."""
    b, k_img = x_flat.shape
    d = w_img.shape[1]
    n_cls_pad = txt_nT.shape[1]

    # --- tile sizes ---------------------------------------------------------
    # tb: largest batch tile that fits (multiple of 8, ideally 256 to match the
    #     256-wide MXU) — every batch tile re-streams all of w_img from HBM.
    # tk: K-reduction tile so w_img never has to fit VMEM in one block.
    # Re-derive (tb, tk) for v7x (64 MiB VMEM, 32 MiB scoped default): e.g.
    # tb=256, tk=2048, D=512 keeps double-buffered inputs + accumulator < 8 MiB.
    tb = min(_round_up(tb, 8), _round_up(b, 8))
    tk = min(_round_up(tk, 128), _round_up(k_img, 128))
    b_pad = _round_up(b, tb)
    k_pad = _round_up(k_img, tk)
    nb, nk = b_pad // tb, k_pad // tk

    x_p = x_flat
    if (b_pad, k_pad) != (b, k_img):
        x_p = jnp.pad(x_flat, ((0, b_pad - b), (0, k_pad - k_img)))
    w_p = w_img
    if k_pad != k_img:
        w_p = jnp.pad(w_img, ((0, k_pad - k_img), (0, 0)))

    w_kwargs = {}
    if w_img_buffers != 2:
        # Deeper weight-stream buffering: useful on v5e (low HBM BW, 128 MiB
        # VMEM headroom) to keep the weight DMA fully hidden.
        w_kwargs["pipeline_mode"] = pl.Buffered(w_img_buffers)

    return pl.pallas_call(
        _image_logits_kernel,
        out_shape=jax.ShapeDtypeStruct((b_pad, n_cls_pad), jnp.float32),
        grid=(nb, nk),
        in_specs=[
            pl.BlockSpec(memory_space=pltpu.MemorySpace.SMEM),      # scale (1,)
            pl.BlockSpec((tb, tk), lambda i, k: (i, k)),            # image tile
            pl.BlockSpec((tk, d), lambda i, k: (k, 0), **w_kwargs), # w_img tile
            pl.BlockSpec((d, n_cls_pad), lambda i, k: (0, 0)),      # txt_n^T
        ],
        out_specs=pl.BlockSpec((tb, n_cls_pad), lambda i, k: (i, 0)),
        scratch_shapes=[pltpu.VMEM((tb, d), jnp.float32)],          # f32 accumulator
        compiler_params=pltpu.CompilerParams(
            dimension_semantics=("parallel", "arbitrary"),
            vmem_limit_bytes=vmem_limit_bytes),
    )(scale, x_p, w_p, txt_nT)


# ----------------------------------------------------------------------------
# Synthetic MyCustomCLIP parameters + forward
# ----------------------------------------------------------------------------

def init_params(key, *, in_ch=3, img_size=16, embed_dim=128, d_model=64,
                n_cls=8, n_ctx=4, n_suffix=3, dtype=jnp.bfloat16):
    """Model weights live in the CLIP 'model dtype' (bf16, TPU analog of fp16)."""
    keys = jax.random.split(key, 6)
    k_img, k_ctx, k_prefix, k_suffix, k_pos, k_proj = keys
    in_dim = in_ch * img_size * img_size
    n_tok = 1 + n_ctx + n_suffix
    return {
        # image_encoder stem (stand-in for clip_model.visual)
        "w_img": (0.02 * jax.random.normal(k_img, (in_dim, embed_dim),
                                           jnp.float32)).astype(dtype),
        # PromptLearner: learnable context + frozen prefix/suffix embeddings.
        "ctx": (0.02 * jax.random.normal(k_ctx, (n_ctx, d_model),
                                         jnp.float32)).astype(dtype),
        "prefix": (0.02 * jax.random.normal(k_prefix, (n_cls, 1, d_model),
                                            jnp.float32)).astype(dtype),
        "suffix": (0.02 * jax.random.normal(k_suffix, (n_cls, n_suffix, d_model),
                                            jnp.float32)).astype(dtype),
        # TextEncoder pieces
        "pos_emb": (0.01 * jax.random.normal(k_pos, (n_tok, d_model),
                                             jnp.float32)).astype(dtype),
        "text_projection": (0.02 * jax.random.normal(k_proj, (d_model, embed_dim),
                                                     jnp.float32)).astype(dtype),
        # CLIP default: logit_scale = ln(1 / 0.07), f32
        "logit_scale": jnp.array(jnp.log(1.0 / 0.07), jnp.float32),
    }


def my_custom_clip_forward(params, image, *, tb=256, tk=2048, w_img_buffers=2):
    """image: NCHW [B, C, H, W] f32 -> logits [B, n_cls] f32."""
    b = image.shape[0]
    n_cls = params["suffix"].shape[0]
    n_cls_pad = _round_up(n_cls, 128)

    # image.type(self.dtype): the model-dtype cast happens per-tile inside the
    # kernel (no wrapper-side HBM round-trip); reshape is a free view.
    x_flat = image.reshape(b, -1)                               # [B, C*H*W] f32

    # Only the EOT (= last) token of concat(prefix, ctx, suffix) is consumed by
    # the linear text-encoder stand-in (see TODOs at the top).
    suffix_last = params["suffix"][:, -1, :]                    # [n_cls, d_model]
    pos_last = params["pos_emb"][-1:, :]                        # [1, d_model]
    txt_nT = text_features_transposed(suffix_last, pos_last,
                                      params["text_projection"], n_cls_pad)

    # exp(logit_scale) folded once, host-side.
    scale = jnp.exp(params["logit_scale"]).reshape(1).astype(jnp.float32)

    logits_pad = fused_clip_head(scale, x_flat, params["w_img"], txt_nT,
                                 tb=tb, tk=tk, w_img_buffers=w_img_buffers)
    return logits_pad[:b, :n_cls]


def _reference_forward(params, image):
    """Pure-JAX reference following the full module math (f32, with the same
    model-dtype casts the fp16/bf16 CLIP forward implies)."""
    f32 = jnp.float32
    b = image.shape[0]
    n_cls = params["prefix"].shape[0]
    n_ctx, d_model = params["ctx"].shape

    # image_encoder(image.type(dtype))
    x = image.astype(jnp.bfloat16).astype(f32).reshape(b, -1)
    img_f = x @ params["w_img"].astype(f32)

    # prompt_learner(): concat(prefix, ctx, suffix) along the token axis
    ctx_e = jnp.broadcast_to(params["ctx"][None].astype(f32), (n_cls, n_ctx, d_model))
    prompts = jnp.concatenate(
        [params["prefix"].astype(f32), ctx_e, params["suffix"].astype(f32)], axis=1)

    # text_encoder: + pos_emb, take EOT (= last) token, project in model dtype
    x_t = prompts + params["pos_emb"][None].astype(f32)
    eot = x_t[:, -1, :].astype(jnp.bfloat16).astype(f32)
    txt_f = eot @ params["text_projection"].astype(f32)

    img_n = img_f / jnp.linalg.norm(img_f, axis=-1, keepdims=True)
    txt_n = txt_f / jnp.linalg.norm(txt_f, axis=-1, keepdims=True)
    return jnp.exp(params["logit_scale"]) * img_n @ txt_n.T


if __name__ == "__main__":
    key = jax.random.PRNGKey(0)
    k_param, k_img = jax.random.split(key)

    B, C, H, W = 2, 3, 16, 16
    params = init_params(k_param, in_ch=C, img_size=H)
    image = jax.random.normal(k_img, (B, C, H, W), jnp.float32)   # NCHW, as PyTorch

    # tk=256 at toy size (K = 3*16*16 = 768) -> a 3-step K reduction, which
    # exercises the VMEM-accumulator init/finalize path end to end.
    fwd = jax.jit(functools.partial(my_custom_clip_forward, tb=256, tk=256))
    logits = jax.block_until_ready(fwd(params, image))

    ref = _reference_forward(params, image)
    assert logits.shape == (B, params["prefix"].shape[0]), logits.shape
    # bf16 feed of the final logits matmul introduces small drift vs the f32
    # reference -> slightly relaxed tolerance.
    max_err = jnp.max(jnp.abs(logits - ref))
    assert jnp.allclose(logits, ref, rtol=1e-2, atol=3e-2), f"max abs err {max_err}"

    print("KERNEL_OK")
</pallas_src>

<mosaic_0001>
module attributes {stable_mosaic.version = 11 : i64} {
  func.func @_text_features_kernel(%arg0: i32, %arg1: memref<128x64xbf16, #tpu.memory_space<vmem>>, %arg2: memref<1x64xbf16, #tpu.memory_space<vmem>>, %arg3: memref<64x128xbf16, #tpu.memory_space<vmem>>, %arg4: memref<128x128xbf16, #tpu.memory_space<vmem>>) attributes {dimension_semantics = [#tpu.dimension_semantics<arbitrary>], iteration_bounds = array<i64: 1>, scalar_prefetch = 0 : i64, scratch_operands = 0 : i64, tpu.core_type = #tpu.core_type<tc>, window_params = [{pipeline_mode = #tpu.pipeline_mode<synchronous>, transform_indices = @transform_0, window_bounds = array<i64: 128, 64>}, {pipeline_mode = #tpu.pipeline_mode<synchronous>, transform_indices = @transform_1, window_bounds = array<i64: 1, 64>}, {pipeline_mode = #tpu.pipeline_mode<synchronous>, transform_indices = @transform_2, window_bounds = array<i64: 64, 128>}, {pipeline_mode = #tpu.pipeline_mode<synchronous>, transform_indices = @transform_3, window_bounds = array<i64: 128, 128>}]} {
    %c0 = arith.constant 0 : index
    %c0_0 = arith.constant 0 : index
    %0 = vector.load %arg1[%c0, %c0_0] : memref<128x64xbf16, #tpu.memory_space<vmem>>, vector<128x64xbf16>
    %1 = arith.extf %0 : vector<128x64xbf16> to vector<128x64xf32>
    %c0_1 = arith.constant 0 : index
    %c0_2 = arith.constant 0 : index
    %2 = vector.load %arg2[%c0_1, %c0_2] : memref<1x64xbf16, #tpu.memory_space<vmem>>, vector<1x64xbf16>
    %3 = arith.extf %2 : vector<1x64xbf16> to vector<1x64xf32>
    %4 = vector.broadcast %3 : vector<1x64xf32> to vector<128x64xf32>
    %5 = arith.addf %1, %4 : vector<128x64xf32>
    %6 = arith.truncf %5 : vector<128x64xf32> to vector<128x64xbf16>
    %c0_3 = arith.constant 0 : index
    %c0_4 = arith.constant 0 : index
    %7 = vector.load %arg3[%c0_3, %c0_4] : memref<64x128xbf16, #tpu.memory_space<vmem>>, vector<64x128xbf16>
    %cst = arith.constant dense<0.000000e+00> : vector<128x128xf32>
    %8 = tpu.matmul %6, %7, %cst {dimension_numbers = #tpu.dot_dimension_numbers<[1], [0], [0], [1], [0, 0, 1, 1], [], []>} : vector<128x64xbf16>, vector<64x128xbf16>, vector<128x128xf32> -> vector<128x128xf32>
    %9 = arith.mulf %8, %8 : vector<128x128xf32>
    %cst_5 = arith.constant dense<0.000000e+00> : vector<128xf32>
    %10 = vector.multi_reduction <add>, %9, %cst_5 [1] : vector<128x128xf32> to vector<128xf32>
    %11 = vector.shape_cast %10 : vector<128xf32> to vector<128x1xf32>
    %cst_6 = arith.constant 1.000000e-30 : f32
    %12 = vector.broadcast %cst_6 : f32 to vector<128x1xf32>
    %13 = arith.addf %11, %12 : vector<128x1xf32>
    %14 = math.rsqrt %13 : vector<128x1xf32>
    %15 = vector.broadcast %14 : vector<128x1xf32> to vector<128x128xf32>
    %16 = arith.mulf %8, %15 : vector<128x128xf32>
    %17 = arith.truncf %16 : vector<128x128xf32> to vector<128x128xbf16>
    %18 = tpu.transpose %17, [1, 0] : vector<128x128xbf16> -> vector<128x128xbf16>
    %c0_7 = arith.constant 0 : index
    %c0_8 = arith.constant 0 : index
    %19 = vector.load %arg4[%c0_7, %c0_8] : memref<128x128xbf16, #tpu.memory_space<vmem>>, vector<128x128xbf16>
    tpu.vector_store %arg4[%c0_7, %c0_8], %18 {strides = array<i32>} : memref<128x128xbf16, #tpu.memory_space<vmem>>, vector<128x128xbf16>,
    return
  }
  func.func @transform_0(%arg0: i32) -> (i32, i32) {
    %c0_i32 = arith.constant 0 : i32
    %c0_i32_0 = arith.constant 0 : i32
    %c0_i32_1 = arith.constant 0 : i32
    return %c0_i32, %c0_i32_0 : i32, i32
  }
  func.func @transform_1(%arg0: i32) -> (i32, i32) {
    %c0_i32 = arith.constant 0 : i32
    %c0_i32_0 = arith.constant 0 : i32
    %c0_i32_1 = arith.constant 0 : i32
    return %c0_i32, %c0_i32_0 : i32, i32
  }
  func.func @transform_2(%arg0: i32) -> (i32, i32) {
    %c0_i32 = arith.constant 0 : i32
    %c0_i32_0 = arith.constant 0 : i32
    %c0_i32_1 = arith.constant 0 : i32
    return %c0_i32, %c0_i32_0 : i32, i32
  }
  func.func @transform_3(%arg0: i32) -> (i32, i32) {
    %c0_i32 = arith.constant 0 : i32
    %c0_i32_0 = arith.constant 0 : i32
    %c0_i32_1 = arith.constant 0 : i32
    return %c0_i32, %c0_i32_0 : i32, i32
  }
}

module attributes {stable_mosaic.version = 11 : i64} {
  func.func @_image_logits_kernel(%arg0: i32, %arg1: i32, %arg2: memref<1xf32, #tpu.memory_space<smem>>, %arg3: memref<8x256xf32, #tpu.memory_space<vmem>>, %arg4: memref<256x128xbf16, #tpu.memory_space<vmem>>, %arg5: memref<128x128xbf16, #tpu.memory_space<vmem>>, %arg6: memref<8x128xf32, #tpu.memory_space<vmem>>, %arg7: memref<8x128xf32, #tpu.memory_space<vmem>>) attributes {dimension_semantics = [#tpu.dimension_semantics<parallel>, #tpu.dimension_semantics<arbitrary>], iteration_bounds = array<i64: 1, 3>, scalar_prefetch = 0 : i64, scratch_operands = 1 : i64, tpu.core_type = #tpu.core_type<tc>, window_params = [{transform_indices = @transform_0, window_bounds = array<i64: 1>}, {transform_indices = @transform_1, window_bounds = array<i64: 8, 256>}, {transform_indices = @transform_2, window_bounds = array<i64: 256, 128>}, {pipeline_mode = #tpu.pipeline_mode<synchronous>, transform_indices = @transform_3, window_bounds = array<i64: 128, 128>}, {transform_indices = @transform_4, window_bounds = array<i64: 8, 128>}]} {
    %c0_i32 = arith.constant 0 : i32
    %0 = arith.cmpi eq, %arg1, %c0_i32 : i32
    %1 = arith.extui %0 : i1 to i32
    %c0_i32_0 = arith.constant 0 : i32
    %2 = arith.cmpi ne, %1, %c0_i32_0 : i32
    scf.if %2 {
      %cst_9 = arith.constant 0.000000e+00 : f32
      %13 = vector.broadcast %cst_9 : f32 to vector<8x128xf32>
      %c0_10 = arith.constant 0 : index
      %c0_11 = arith.constant 0 : index
      %14 = vector.load %arg7[%c0_10, %c0_11] : memref<8x128xf32, #tpu.memory_space<vmem>>, vector<8x128xf32>
      tpu.vector_store %arg7[%c0_10, %c0_11], %13 {strides = array<i32>} : memref<8x128xf32, #tpu.memory_space<vmem>>, vector<8x128xf32>,
    } else {
    }
    %c0 = arith.constant 0 : index
    %c0_1 = arith.constant 0 : index
    %3 = vector.load %arg7[%c0, %c0_1] : memref<8x128xf32, #tpu.memory_space<vmem>>, vector<8x128xf32>
    %c0_2 = arith.constant 0 : index
    %c0_3 = arith.constant 0 : index
    %4 = vector.load %arg3[%c0_2, %c0_3] : memref<8x256xf32, #tpu.memory_space<vmem>>, vector<8x256xf32>
    %5 = arith.truncf %4 : vector<8x256xf32> to vector<8x256xbf16>
    %c0_4 = arith.constant 0 : index
    %c0_5 = arith.constant 0 : index
    %6 = vector.load %arg4[%c0_4, %c0_5] : memref<256x128xbf16, #tpu.memory_space<vmem>>, vector<256x128xbf16>
    %cst = arith.constant dense<0.000000e+00> : vector<8x128xf32>
    %7 = tpu.matmul %5, %6, %cst {dimension_numbers = #tpu.dot_dimension_numbers<[1], [0], [0], [1], [0, 0, 1, 1], [], []>} : vector<8x256xbf16>, vector<256x128xbf16>, vector<8x128xf32> -> vector<8x128xf32>
    %8 = arith.addf %3, %7 : vector<8x128xf32>
    %c0_6 = arith.constant 0 : index
    %c0_7 = arith.constant 0 : index
    %9 = vector.load %arg7[%c0_6, %c0_7] : memref<8x128xf32, #tpu.memory_space<vmem>>, vector<8x128xf32>
    tpu.vector_store %arg7[%c0_6, %c0_7], %8 {strides = array<i32>} : memref<8x128xf32, #tpu.memory_space<vmem>>, vector<8x128xf32>,
    %c2_i32 = arith.constant 2 : i32
    %10 = arith.cmpi eq, %arg1, %c2_i32 : i32
    %11 = arith.extui %10 : i1 to i32
    %c0_i32_8 = arith.constant 0 : i32
    %12 = arith.cmpi ne, %11, %c0_i32_8 : i32
    scf.if %12 {
      %c0_9 = arith.constant 0 : index
      %c0_10 = arith.constant 0 : index
      %13 = vector.load %arg7[%c0_9, %c0_10] : memref<8x128xf32, #tpu.memory_space<vmem>>, vector<8x128xf32>
      %14 = arith.mulf %13, %13 : vector<8x128xf32>
      %cst_11 = arith.constant dense<0.000000e+00> : vector<8xf32>
      %15 = vector.multi_reduction <add>, %14, %cst_11 [1] : vector<8x128xf32> to vector<8xf32>
      %16 = vector.shape_cast %15 : vector<8xf32> to vector<8x1xf32>
      %cst_12 = arith.constant 1.000000e-30 : f32
      %17 = vector.broadcast %cst_12 : f32 to vector<8x1xf32>
      %18 = arith.addf %16, %17 : vector<8x1xf32>
      %19 = math.rsqrt %18 : vector<8x1xf32>
      %c0_13 = arith.constant 0 : index
      %20 = memref.load %arg2[%c0_13] : memref<1xf32, #tpu.memory_space<smem>>
      %21 = vector.broadcast %20 : f32 to vector<8x1xf32>
      %22 = arith.mulf %19, %21 : vector<8x1xf32>
      %23 = vector.broadcast %22 : vector<8x1xf32> to vector<8x128xf32>
      %24 = arith.mulf %13, %23 : vector<8x128xf32>
      %25 = arith.truncf %24 : vector<8x128xf32> to vector<8x128xbf16>
      %c0_14 = arith.constant 0 : index
      %c0_15 = arith.constant 0 : index
      %26 = vector.load %arg5[%c0_14, %c0_15] : memref<128x128xbf16, #tpu.memory_space<vmem>>, vector<128x128xbf16>
      %cst_16 = arith.constant dense<0.000000e+00> : vector<8x128xf32>
      %27 = tpu.matmul %25, %26, %cst_16 {dimension_numbers = #tpu.dot_dimension_numbers<[1], [0], [0], [1], [0, 0, 1, 1], [], []>} : vector<8x128xbf16>, vector<128x128xbf16>, vector<8x128xf32> -> vector<8x128xf32>
      %c0_17 = arith.constant 0 : index
      %c0_18 = arith.constant 0 : index
      %28 = vector.load %arg6[%c0_17, %c0_18] : memref<8x128xf32, #tpu.memory_space<vmem>>, vector<8x128xf32>
      tpu.vector_store %arg6[%c0_17, %c0_18], %27 {strides = array<i32>} : memref<8x128xf32, #tpu.memory_space<vmem>>, vector<8x128xf32>,
    } else {
    }
    return
  }
  func.func @transform_0(%arg0: i32, %arg1: i32) -> i32 {
    %c0_i32 = arith.constant 0 : i32
    %c0_i32_0 = arith.constant 0 : i32
    return %c0_i32 : i32
  }
  func.func @transform_1(%arg0: i32, %arg1: i32) -> (i32, i32) {
    %c0_i32 = arith.constant 0 : i32
    return %arg0, %arg1 : i32, i32
  }
  func.func @transform_2(%arg0: i32, %arg1: i32) -> (i32, i32) {
    %c0_i32 = arith.constant 0 : i32
    %c0_i32_0 = arith.constant 0 : i32
    return %arg1, %c0_i32 : i32, i32
  }
  func.func @transform_3(%arg0: i32, %arg1: i32) -> (i32, i32) {
    %c0_i32 = arith.constant 0 : i32
    %c0_i32_0 = arith.constant 0 : i32
    %c0_i32_1 = arith.constant 0 : i32
    return %c0_i32, %c0_i32_0 : i32, i32
  }
  func.func @transform_4(%arg0: i32, %arg1: i32) -> (i32, i32) {
    %c0_i32 = arith.constant 0 : i32
    %c0_i32_0 = arith.constant 0 : i32
    return %arg0, %c0_i32 : i32, i32
  }
}

</mosaic_0001>

<bundles_post_ra>
// kernel: my_custom_clip_forward.3
= control target key start
LH: loop header
LB: loop body
LE: loop exit
PB: predicated region body
PF: predicated region fallthrough
CT: control target
= control target key end

     0   :  { %s821_s17 = smov 0   ;;  %s823_s18 = smov 0   ;;  %s909_s0 = inlined_call_operand.<no memory space> [shape: f32[1], index: 0, kind: input, shape index: {}]   ;;  %s910_s1 = inlined_call_operand.vmem [shape: f32[8,768], index: 1, kind: input, shape index: {}]   ;;  %s911_s2 = inlined_call_operand.vmem [shape: bf16[768,128], index: 2, kind: input, shape index: {}]   ;;  %s912_s3 = inlined_call_operand.vmem [shape: bf16[128,128], index: 3, kind: input, shape index: {}]   ;;  %s913_s4 = inlined_call_operand.vmem [shape: f32[8,128], index: 4, kind: output, shape index: {}]  }
   0x1   :  { %9 = sst [smem:[#allocation3]] %s909_s0  ;;  %s825_s19 = smov 0  }
   0x2 LB: > { %s24_s0 = sadd.s32 1, %s784_s18  ;;  %p628_p0 = scmp.ge.s32.totalorder %s788_s19, 1  ;;  %s788_s19 = sphi %s825_s19, %s15_s19   ;;  %s784_s18 = sphi %s823_s18, %s915_s18   ;;  %s780_s17 = sphi %s821_s17, %s914_s17  }
   0x3   : > { %p25_p1 = scmp.ge.s32.totalorder %s24_s0, 3  ;;  %p193_p2 = scmp.lt.s32.totalorder %s788_s19, 4 }
   0x5   : > { %s917_s0 = smov (%p25_p1, %s24_s0), 0  ;;  %p194_p3 = pnand %p628_p0, %p193_p2 }
   0x6   : > { %s629_s20 = sshll.u32 (!%p194_p3), %s780_s17, 1  ;;  %s631_s21 = sshll.u32 (!%p194_p3), %s780_s17, 5 }
   0x7   : > { %197 = sbr.rel (%p194_p3) target bundleno = 660 (0x294), region = 36  ;;  %p230_p4 = scmp.lt.s32.totalorder (!%p194_p3), %s629_s20, 5 }
   0x8   : > { %p238_p5 = scmp.lt.s32.totalorder (!%p194_p3), %s631_s21, 95  ;;  %p633_p6 = scmp.ne.s32.totalorder (!%p194_p3), %s780_s17, 0 }
   0xe   : > { %s919_s20 = smov (!%p230_p4, %s629_s20), 5  ;;  %s921_s21 = smov (!%p238_p5, %s631_s21), 95 }
   0xf   : > { %s630_s22 = sshll.u32 %s919_s20, 3  ;;  %s632_s26 = sshll.u32 %s921_s21, 2  ;;  %v790_v0 = vmov (!%p633_p6), 0.0  }
  0x10   : > { %s846_s25 = scalar_lea.vmem %s910_s1, %s630_s22  ;;  %s851_s29 = scalar_lea.vmem %s911_s2, %s632_s26  ;;  %252 = vst [vmem:[#allocation2] sm:$0xff] (!%p633_p6), %v790_v0 }
  0x11   : > { %251 = sbr.rel (%p633_p6) target bundleno = 24 (0x18), region = 40 }
  0x18 PF: > { %v740_v1 = vld [vmem:[%s851_s29 + $0x40] sm:$0xff]   ;;  %v742_v3 = vld [vmem:[%s851_s29 + $0x48] sm:$0xff]   ;;  %v744_v5 = vld [vmem:[%s851_s29 + $0x50] sm:$0xff]   ;;  %p650_p7 = scmp.ne.s32.totalorder %s780_s17, 2 }
  0x19   : > { %v741_v2 = vld [vmem:[%s851_s29] sm:$0xff]   ;;  %662 = vmatprep.subr.bf16.mxu0 %v740_v1  ;;  %v743_v4 = vld [vmem:[%s851_s29 + $0x8] sm:$0xff]   ;;  %v745_v6 = vld [vmem:[%s851_s29 + $0x10] sm:$0xff]   ;;  %v791_v30 = vmov (!%p650_p7), 0.0   ;;  %vm792_vm0 = vmmov (!%p650_p7), 0   ;;  %s438_s22 = sld [smem:[#allocation3]] (!%p650_p7) }
  0x1a   : > { %663 = vmatpush3.bf16.msra.mxu0 %v741_v2  ;;  %v746_v7 = vld [vmem:[%s851_s29 + $0x58] sm:$0xff]   ;;  %v748_v9 = vld [vmem:[%s851_s29 + $0x60] sm:$0xff]   ;;  %v750_v11 = vld [vmem:[%s851_s29 + $0x68] sm:$0xff]  }
  0x1b   : > { %664 = vmatprep.subr.bf16.mxu0 %v742_v3  ;;  %v747_v8 = vld [vmem:[%s851_s29 + $0x18] sm:$0xff]   ;;  %v749_v10 = vld [vmem:[%s851_s29 + $0x20] sm:$0xff]   ;;  %v255_v12 = vld [vmem:[%s846_s25 + $0x8] sm:$0xff] }
  0x1c   : > { %v257_v13 = vpack.c.bf16 %v255_v12, %v255_v12  ;;  %v751_v14 = vld [vmem:[%s851_s29 + $0x28] sm:$0xff]   ;;  %v752_v15 = vld [vmem:[%s851_s29 + $0x70] sm:$0xff]   ;;  %v754_v17 = vld [vmem:[%s851_s29 + $0x78] sm:$0xff]  }
  0x1d   : > { %v753_v16 = vld [vmem:[%s851_s29 + $0x30] sm:$0xff]   ;;  %v755_v18 = vld [vmem:[%s851_s29 + $0x38] sm:$0xff]   ;;  %v254_v19 = vld [vmem:[%s846_s25] sm:$0xff] }
  0x1e   : > { %665 = vmatpush3.bf16.msra.mxu0 %v743_v4  ;;  %418 = vmatprep.mubr.bf16.mxu0 %v257_v13  ;;  %v256_v20 = vpack.c.bf16 %v254_v19, %v254_v19  ;;  %v253_v22 = vld [vmem:[#allocation2] sm:$0xff]  ;;  %v757_v32 = vld [vmem:[%s912_s3 + $0x8] sm:$0xff] (!%p650_p7)   ;;  %v758_v33 = vld [vmem:[%s912_s3 + $0x10] sm:$0xff] (!%p650_p7)  }
  0x1f   : > { %666 = vmatprep.subr.bf16.mxu0 %v744_v5  ;;  %v756_v31 = vld [vmem:[%s912_s3] sm:$0xff] (!%p650_p7)   ;;  %v759_v34 = vld [vmem:[%s912_s3 + $0x18] sm:$0xff] (!%p650_p7)   ;;  %v761_v36 = vld [vmem:[%s912_s3 + $0x28] sm:$0xff] (!%p650_p7)   ;;  %v439_v41 = vstv (!%p650_p7), %s438_s22 }
  0x20   : > { %v760_v35 = vld [vmem:[%s912_s3 + $0x20] sm:$0xff] (!%p650_p7)   ;;  %v762_v37 = vld [vmem:[%s912_s3 + $0x30] sm:$0xff] (!%p650_p7)   ;;  %v763_v38 = vld [vmem:[%s912_s3 + $0x38] sm:$0xff] (!%p650_p7)  }
  0x22   : > { %667 = vmatpush3.bf16.msra.mxu0 %v745_v6 }
  0x23   : > { %668 = vmatprep.subr.bf16.mxu0 %v746_v7 }
  0x26   : > { %669 = vmatpush3.bf16.msra.mxu0 %v747_v8 }
  0x27   : > { %670 = vmatprep.subr.bf16.mxu0 %v748_v9 }
  0x2a   : > { %671 = vmatpush3.bf16.msra.mxu0 %v749_v10 }
  0x2b   : > { %672 = vmatprep.subr.bf16.mxu0 %v750_v11 }
  0x2e   : > { %673 = vmatpush3.bf16.msra.mxu0 %v751_v14 }
  0x2f   : > { %674 = vmatprep.subr.bf16.mxu0 %v752_v15 }
  0x32   : > { %675 = vmatpush3.bf16.msra.mxu0 %v753_v16 }
  0x33   : > { %676 = vmatprep.subr.bf16.mxu0 %v754_v17 }
  0x36   : > { %677 = vmatpush3.bf16.msra.mxu0 %v755_v18 }
  0x37   : > { %693 = vmatprep.subr.bf16.mxu0 (!%p650_p7), %v791_v30 }
  0x39   : > { %419 = vmatmul.mubr.bf16.vlgmr.msra.gmra.mrb[0].mxu0 %v256_v20 }
  0x3a   : > { %694 = vmatpush3.bf16.msra.mxu0 (!%p650_p7), %v756_v31  ;;  %709 = vmatprep.mubr.msk.bf16.mxu0 (!%p650_p7), %vm792_vm0, %v791_v30 }
  0x3b   : > { %695 = vmatprep.subr.bf16.mxu0 (!%p650_p7), %v791_v30 }
  0x3e   : > { %696 = vmatpush3.bf16.msra.mxu0 (!%p650_p7), %v757_v32 }
  0x3f   : > { %697 = vmatprep.subr.bf16.mxu0 (!%p650_p7), %v791_v30 }
  0x42   : > { %698 = vmatpush3.bf16.msra.mxu0 (!%p650_p7), %v758_v33 }
  0x43   : > { %699 = vmatprep.subr.bf16.mxu0 (!%p650_p7), %v791_v30 }
  0x46   : > { %700 = vmatpush3.bf16.msra.mxu0 (!%p650_p7), %v759_v34 }
  0x47   : > { %701 = vmatprep.subr.bf16.mxu0 (!%p650_p7), %v791_v30 }
  0x4a   : > { %702 = vmatpush3.bf16.msra.mxu0 (!%p650_p7), %v760_v35 }
  0x4b   : > { %703 = vmatprep.subr.bf16.mxu0 (!%p650_p7), %v791_v30 }
  0x4e   : > { %704 = vmatpush3.bf16.msra.mxu0 (!%p650_p7), %v761_v36 }
  0x4f   : > { %705 = vmatprep.subr.bf16.mxu0 (!%p650_p7), %v791_v30 }
  0x52   : > { %706 = vmatpush3.bf16.msra.mxu0 (!%p650_p7), %v762_v37 }
  0x53   : > { %707 = vmatprep.subr.bf16.mxu0 (!%p650_p7), %v791_v30 }
  0x56   : > { %708 = vmatpush3.bf16.msra.mxu0 (!%p650_p7), %v763_v38 }
 0x10c   : > { %v678_v21 = vpop.f32.mrb[0].mxu0  ;;  %431 = sbr.rel (%p650_p7) target bundleno = 660 (0x294), region = 44 }
 0x10d   : > { %v679_v23 = vpop.f32.mrb[1].mxu0 }
 0x10e   : > { %v680_v24 = vadd.f32 %v679_v23, %v678_v21  ;;  %v681_v25 = vpop.f32.mrb[2].mxu0 }
 0x10f   : > { %v682_v26 = vpop.f32.mrb[3].mxu0 }
 0x110   : > { %v426_v27 = vadd.f32 %v680_v24, %v253_v22 }
 0x112   : > { %427 = vst [vmem:[#allocation2] sm:$0xff] %v426_v27 }
 0x119   : > { %v432_v28 = vld [vmem:[#allocation2] sm:$0xff] }
 0x11a   : > { %v433_v29 = vmul.f32 %v432_v28, %v432_v28 }
 0x11c   : > { %434 = vadd.xlane.f32.xlu0 %v433_v29 }
 0x1a9   : > { %v435_v39 = vpop.xlane.xlu0 %434 }
 0x1aa   : > { %v436_v40 = vadd.f32 1e-30, %v435_v39 }
 0x1ac   : > { %764 = vrsqrt.f32 %v436_v40 }
 0x1b6   : > { %v765_v42 = vpop.eup %764 }
 0x1b7   : > { %v440_v43 = vmul.f32 %v765_v42, %v439_v41 }
 0x1b9   : > { %v441_v44 = vmul.f32 %v440_v43, %v432_v28 }
 0x1bb   : > { %v442_v45 = vpack.c.bf16 %v441_v44, %v441_v44 }
 0x1bd   : > { %710 = vmatmul.mubr.bf16.vlgmr.msra.gmra.mrb[0].mxu0 %v442_v45 }
 0x290   : > { %v541_v46 = vpop.f32.mrb[0].mxu0 }
 0x291   : > { %547 = vst [vmem:[%s913_s4] sm:$0xff] %v541_v46  ;;  %v711_v47 = vpop.f32.mrb[1].mxu0 }
 0x292   : > { %v544_v48 = vpop.f32.mrb[2].mxu0 }
 0x293   : > { %v712_v49 = vpop.f32.mrb[3].mxu0 }
 0x294 PF: > { %s15_s19 = sadd.s32 1, %s788_s19   ;;  %s914_s17 = smov %s784_s18 }
 0x295   : > { %p12_p8 = scmp.ge.s32.totalorder %s15_s19, 5   ;;  %s915_s18 = smov %s917_s0 }
 0x297   :  { %14 = sbr.rel (!%p12_p8) target bundleno = 2 (0x2), region = 77 }

// kernel: my_custom_clip_forward.2
= control target key start
LH: loop header
LB: loop body
LE: loop exit
PB: predicated region body
PF: predicated region fallthrough
CT: control target
= control target key end

     0   :  { %v49_v0 = vlaneseq  ;;  %vm109_vm0 = vcmask 523264   ;;  %s769_s2 = inlined_call_operand.vmem [shape: bf16[64,128], index: 2, kind: input, shape index: {}]   ;;  %s770_s0 = inlined_call_operand.vmem [shape: bf16[128,64], index: 0, kind: input, shape index: {}]   ;;  %s771_s1 = inlined_call_operand.vmem [shape: bf16[1,64], index: 1, kind: input, shape index: {}]   ;;  %s772_s3 = inlined_call_operand.vmem [shape: bf16[128,128], index: 3, kind: output, shape index: {}]  }
   0x1   :  { %v538_v1 = vld [vmem:[%s769_s2] sm:$0xff]   ;;  %v539_v2 = vld [vmem:[%s769_s2 + $0x8] sm:$0xff]   ;;  %v540_v4 = vld [vmem:[%s769_s2 + $0x10] sm:$0xff]  }
   0x2   :  { %v50_v3 = vshrl.u32 %v49_v0, 7  ;;  %506 = vmatprep.subr.bf16.mxu0 %v538_v1  ;;  %530 = vmatprep.subr.bf16.mxu1 %v538_v1  ;;  %v456_v6 = vld [vmem:[%s770_s0] sm:$0xff]   ;;  %v487_v8 = vld [vmem:[%s770_s0 + $0x8] sm:$0xff]   ;;  %v488_v15 = vld [vmem:[%s770_s0 + $0x10] sm:$0xff]  }
   0x3   :  { %507 = vmatpush3.bf16.msra.mxu0 %v538_v1  ;;  %534 = vmatpush3.bf16.msra.mxu1 %v538_v1  ;;  %v47_v7 = vld [vmem:[%s771_s1] sm:$0x1]  ;;  %v457_v9 = vunpack.c.l.bf16 %v456_v6  ;;  %v458_v10 = vunpack.c.h.bf16 %v456_v6  ;;  %v461_v12 = vunpack.c.l.bf16 %v487_v8  ;;  %v491_v14 = vld [vmem:[%s770_s0 + $0x28] sm:$0xff]   ;;  %v462_v16 = vunpack.c.h.bf16 %v487_v8  ;;  %v492_v20 = vld [vmem:[%s770_s0 + $0x30] sm:$0xff]  }
   0x4   :  { %v51_v5 = vsub.s32 0, %v50_v3  ;;  %508 = vmatprep.subr.bf16.mxu0 %v539_v2  ;;  %531 = vmatprep.subr.bf16.mxu1 %v539_v2  ;;  %v48_v11 = vunpack.c.l.bf16 %v47_v7  ;;  %v490_v13 = vld [vmem:[%s770_s0 + $0x20] sm:$0xff]   ;;  %v477_v19 = vunpack.c.l.bf16 %v491_v14  ;;  %v478_v22 = vunpack.c.h.bf16 %v491_v14  ;;  %v541_v24 = vld [vmem:[%s769_s2 + $0x18] sm:$0xff]  }
   0x5   :  { %v473_v17 = vunpack.c.l.bf16 %v490_v13  ;;  %v474_v18 = vunpack.c.h.bf16 %v490_v13  ;;  %v465_v23 = vunpack.c.l.bf16 %v488_v15  ;;  %v466_v25 = vunpack.c.h.bf16 %v488_v15  ;;  %v489_v36 = vld [vmem:[%s770_s0 + $0x18] sm:$0xff]  }
   0x6   :  { %v52_v21 = vrot.slane %v48_v11, %v51_v5  ;;  %v481_v26 = vunpack.c.l.bf16 %v492_v20  ;;  %v482_v27 = vunpack.c.h.bf16 %v492_v20  ;;  %v493_v39 = vld [vmem:[%s770_s0 + $0x38] sm:$0xff]   ;;  %v469_v42 = vunpack.c.l.bf16 %v489_v36 }
   0x7   :  { %509 = vmatpush3.bf16.msra.mxu0 %v539_v2  ;;  %535 = vmatpush3.bf16.msra.mxu1 %v539_v2  ;;  %v470_v43 = vunpack.c.h.bf16 %v489_v36  ;;  %v485_v48 = vunpack.c.l.bf16 %v493_v39  ;;  %v486_v49 = vunpack.c.h.bf16 %v493_v39 }
   0x8   :  { %510 = vmatprep.subr.bf16.mxu0 %v540_v4  ;;  %532 = vmatprep.subr.bf16.mxu1 %v540_v4  ;;  %v53_v28 = vadd.f32 %v457_v9, %v52_v21  ;;  %v54_v29 = vadd.f32 %v458_v10, %v52_v21  ;;  %v55_v30 = vadd.f32 %v461_v12, %v52_v21 }
   0x9   :  { %v56_v31 = vadd.f32 %v462_v16, %v52_v21  ;;  %v61_v32 = vadd.f32 %v473_v17, %v52_v21  ;;  %v62_v33 = vadd.f32 %v474_v18, %v52_v21  ;;  %v63_v34 = vadd.f32 %v477_v19, %v52_v21 }
   0xa   :  { %v64_v35 = vadd.f32 %v478_v22, %v52_v21  ;;  %v69_v37 = vpack.c.bf16 %v54_v29, %v53_v28  ;;  %v57_v38 = vadd.f32 %v465_v23, %v52_v21  ;;  %v58_v41 = vadd.f32 %v466_v25, %v52_v21 }
   0xb   :  { %511 = vmatpush3.bf16.msra.mxu0 %v540_v4  ;;  %536 = vmatpush3.bf16.msra.mxu1 %v540_v4  ;;  %v73_v40 = vpack.c.bf16 %v62_v33, %v61_v32  ;;  %v65_v44 = vadd.f32 %v481_v26, %v52_v21  ;;  %v66_v45 = vadd.f32 %v482_v27, %v52_v21 }
   0xc   :  { %512 = vmatprep.subr.bf16.mxu0 %v541_v24  ;;  %533 = vmatprep.subr.bf16.mxu1 %v541_v24  ;;  %v70_v46 = vpack.c.bf16 %v56_v31, %v55_v30  ;;  %v74_v47 = vpack.c.bf16 %v64_v35, %v63_v34  ;;  %v71_v50 = vpack.c.bf16 %v58_v41, %v57_v38 }
   0xd   :  { %514 = vmatprep.mubr.msk.bf16.mxu0 %vm109_vm0, %v69_v37  ;;  %522 = vmatprep.mubr.msk.bf16.mxu1 %vm109_vm0, %v73_v40  ;;  %v75_v51 = vpack.c.bf16 %v66_v45, %v65_v44  ;;  %v59_v52 = vadd.f32 %v469_v42, %v52_v21  ;;  %v60_v53 = vadd.f32 %v470_v43, %v52_v21 }
   0xe   :  { %v67_v54 = vadd.f32 %v485_v48, %v52_v21  ;;  %v68_v55 = vadd.f32 %v486_v49, %v52_v21 }
   0xf   :  { %513 = vmatpush3.bf16.msra.mxu0 %v541_v24  ;;  %537 = vmatpush3.bf16.msra.mxu1 %v541_v24  ;;  %v72_v56 = vpack.c.bf16 %v60_v53, %v59_v52 }
  0x10   :  { %v76_v57 = vpack.c.bf16 %v68_v55, %v67_v54 }
  0x12   :  { %515 = vmatmul.mubr.msk.bf16.vlgmr.msra.gmra.mrb[0].mxu0 %vm109_vm0, %v70_v46  ;;  %523 = vmatmul.mubr.msk.bf16.vlgmr.msra.gmra.mrb[0].mxu1 %vm109_vm0, %v74_v47 }
  0x13   :  { %518 = vmatprep.mubr.msk.bf16.mxu0 %vm109_vm0, %v71_v50  ;;  %526 = vmatprep.mubr.msk.bf16.mxu1 %vm109_vm0, %v75_v51 }
  0x1a   :  { %519 = vmatmul.mubr.msk.bf16.gmra.mrb[4].mxu0 %vm109_vm0, %v72_v56  ;;  %527 = vmatmul.mubr.msk.bf16.gmra.mrb[4].mxu1 %vm109_vm0, %v76_v57 }
  0xe5   :  { %v641_v58 = vpop.f32.mrb[0].mxu0  ;;  %v643_v59 = vpop.f32.mrb[0].mxu1 }
  0xe6   :  { %v645_v60 = vpop.f32.mrb[1].mxu0  ;;  %v647_v61 = vpop.f32.mrb[1].mxu1  ;;  %v233_v62 = vmul.f32 %v641_v58, %v641_v58  ;;  %v241_v21 = vmul.f32 %v643_v59, %v643_v59 }
  0xe7   :  { %v651_v63 = vpop.f32.mrb[2].mxu0  ;;  %v653_v0 = vpop.f32.mrb[2].mxu1  ;;  %v231_v1 = vmul.f32 %v645_v60, %v645_v60  ;;  %v239_v4 = vmul.f32 %v647_v61, %v647_v61 }
  0xe8   :  { %251 = vadd.xlane.f32.xlu1 %v233_v62  ;;  %v657_v2 = vpop.f32.mrb[3].mxu0  ;;  %v659_v3 = vpop.f32.mrb[3].mxu1  ;;  %v234_v5 = vmul.f32 %v651_v63, %v651_v63  ;;  %v242_v20 = vmul.f32 %v653_v0, %v653_v0 }
  0xe9   :  { %247 = vadd.xlane.f32.xlu0 %v231_v1  ;;  %v240_v9 = vmul.f32 %v659_v3, %v659_v3  ;;  %v232_v12 = vmul.f32 %v657_v2, %v657_v2 }
  0xec   :  { %253 = vadd.xlane.f32.xlu1 %v234_v5 }
  0xed   :  { %263 = vadd.xlane.f32.xlu0 %v239_v4  ;;  %v665_v6 = vpop.f32.mrb[4].mxu0  ;;  %v667_v7 = vpop.f32.mrb[4].mxu1 }
  0xee   :  { %v669_v8 = vpop.f32.mrb[5].mxu0  ;;  %v673_v10 = vpop.f32.mrb[5].mxu1  ;;  %v237_v17 = vmul.f32 %v665_v6, %v665_v6  ;;  %v245_v25 = vmul.f32 %v667_v7, %v667_v7 }
  0xef   :  { %v675_v11 = vpop.f32.mrb[6].mxu0  ;;  %v679_v13 = vpop.f32.mrb[6].mxu1  ;;  %v235_v19 = vmul.f32 %v669_v8, %v669_v8  ;;  %v243_v23 = vmul.f32 %v673_v10, %v673_v10 }
  0xf0   :  { %265 = vadd.xlane.f32.xlu1 %v240_v9  ;;  %v681_v14 = vpop.f32.mrb[7].mxu0  ;;  %v238_v15 = vmul.f32 %v675_v11, %v675_v11  ;;  %v685_v16 = vpop.f32.mrb[7].mxu1  ;;  %v246_v24 = vmul.f32 %v679_v13, %v679_v13 }
  0xf1   :  { %249 = vadd.xlane.f32.xlu0 %v232_v12  ;;  %v236_v18 = vmul.f32 %v681_v14, %v681_v14  ;;  %v244_v22 = vmul.f32 %v685_v16, %v685_v16 }
  0xf4   :  { %261 = vadd.xlane.f32.xlu1 %v238_v15 }
  0xf5   :  { %259 = vadd.xlane.f32.xlu0 %v237_v17 }
  0xf8   :  { %257 = vadd.xlane.f32.xlu1 %v236_v18 }
  0xf9   :  { %255 = vadd.xlane.f32.xlu0 %v235_v19 }
  0xfc   :  { %269 = vadd.xlane.f32.xlu1 %v242_v20 }
  0xfd   :  { %267 = vadd.xlane.f32.xlu0 %v241_v21 }
 0x100   :  { %273 = vadd.xlane.f32.xlu1 %v244_v22 }
 0x101   :  { %271 = vadd.xlane.f32.xlu0 %v243_v23 }
 0x104   :  { %277 = vadd.xlane.f32.xlu1 %v246_v24 }
 0x105   :  { %275 = vadd.xlane.f32.xlu0 %v245_v25 }
 0x175   :  { %v252_v26 = vpop.xlane.xlu1 %251 }
 0x176   :  { %v281_v27 = vadd.f32 1e-30, %v252_v26  ;;  %v248_v28 = vpop.xlane.xlu0 %247 }
 0x177   :  { %v279_v32 = vadd.f32 1e-30, %v248_v28 }
 0x178   :  { %542 = vrsqrt.f32 %v281_v27 }
 0x179   :  { %v254_v29 = vpop.xlane.xlu1 %253 }
 0x17a   :  { %v282_v30 = vadd.f32 1e-30, %v254_v29  ;;  %v264_v31 = vpop.xlane.xlu0 %263 }
 0x17b   :  { %v287_v33 = vadd.f32 1e-30, %v264_v31 }
 0x17c   :  { %544 = vrsqrt.f32 %v282_v30 }
 0x17d   :  { %v266_v34 = vpop.xlane.xlu1 %265  ;;  %546 = vrsqrt.f32 %v287_v33 }
 0x17e   :  { %v288_v35 = vadd.f32 1e-30, %v266_v34  ;;  %v250_v36 = vpop.xlane.xlu0 %249  ;;  %548 = vrsqrt.f32 %v279_v32 }
 0x17f   :  { %v280_v37 = vadd.f32 1e-30, %v250_v36 }
 0x180   :  { %550 = vrsqrt.f32 %v288_v35 }
 0x181   :  { %552 = vrsqrt.f32 %v280_v37  ;;  %v262_v38 = vpop.xlane.xlu1 %261 }
 0x182   :  { %v286_v39 = vadd.f32 1e-30, %v262_v38  ;;  %v260_v40 = vpop.xlane.xlu0 %259  ;;  %v543_v42 = vpop.eup %542 }
 0x183   :  { %v285_v41 = vadd.f32 1e-30, %v260_v40  ;;  %v313_v48 = vmul.f32 %v543_v42, %v641_v58 }
 0x184   :  { %554 = vrsqrt.f32 %v286_v39 }
 0x185   :  { %556 = vrsqrt.f32 %v285_v41  ;;  %v258_v43 = vpop.xlane.xlu1 %257 }
 0x186   :  { %v545_v44 = vpop.eup %544  ;;  %v284_v45 = vadd.f32 1e-30, %v258_v43  ;;  %v256_v46 = vpop.xlane.xlu0 %255 }
 0x187   :  { %v283_v47 = vadd.f32 1e-30, %v256_v46  ;;  %v314_v49 = vmul.f32 %v545_v44, %v651_v63  ;;  %v547_v50 = vpop.eup %546 }
 0x188   :  { %558 = vrsqrt.f32 %v284_v45  ;;  %v549_v51 = vpop.eup %548  ;;  %v319_v1 = vmul.f32 %v547_v50, %v647_v61 }
 0x189   :  { %560 = vrsqrt.f32 %v283_v47  ;;  %v270_v52 = vpop.xlane.xlu1 %269  ;;  %v328_v53 = vpack.c.bf16 %v314_v49, %v313_v48  ;;  %v311_v58 = vmul.f32 %v549_v51, %v645_v60 }
 0x18a   :  { %v551_v54 = vpop.eup %550  ;;  %v290_v55 = vadd.f32 1e-30, %v270_v52  ;;  %v268_v56 = vpop.xlane.xlu0 %267 }
 0x18b   :  { %v553_v57 = vpop.eup %552  ;;  %v289_v62 = vadd.f32 1e-30, %v268_v56  ;;  %v320_v4 = vmul.f32 %v551_v54, %v659_v3 }
 0x18c   :  { %562 = vrsqrt.f32 %v290_v55  ;;  %v312_v63 = vmul.f32 %v553_v57, %v657_v2 }
 0x18d   :  { %564 = vrsqrt.f32 %v289_v62  ;;  %v274_v5 = vpop.xlane.xlu1 %273  ;;  %v331_v9 = vpack.c.bf16 %v320_v4, %v319_v1 }
 0x18e   :  { %v555_v12 = vpop.eup %554  ;;  %v292_v15 = vadd.f32 1e-30, %v274_v5  ;;  %v272_v17 = vpop.xlane.xlu0 %271  ;;  %v327_v18 = vpack.c.bf16 %v312_v63, %v311_v58 }
 0x18f   :  { %v557_v19 = vpop.eup %556  ;;  %v291_v20 = vadd.f32 1e-30, %v272_v17  ;;  %v318_v21 = vmul.f32 %v555_v12, %v675_v11 }
 0x190   :  { %566 = vrsqrt.f32 %v292_v15  ;;  %335 = vxpose.xlu0.c.b16.start [1/8] %v327_v18, 128  ;;  %v317_v61 = vmul.f32 %v557_v19, %v665_v6 }
 0x191   :  { %568 = vrsqrt.f32 %v291_v20  ;;  %v278_v3 = vpop.xlane.xlu1 %277 }
 0x192   :  { %v559_v60 = vpop.eup %558  ;;  %v294_v22 = vadd.f32 1e-30, %v278_v3  ;;  %v276_v2 = vpop.xlane.xlu0 %275  ;;  %v330_v23 = vpack.c.bf16 %v318_v21, %v317_v61 }
 0x193   :  { %v561_v24 = vpop.eup %560  ;;  %v293_v25 = vadd.f32 1e-30, %v276_v2  ;;  %v316_v26 = vmul.f32 %v559_v60, %v681_v14 }
 0x194   :  { %570 = vrsqrt.f32 %v294_v22  ;;  %336 = vxpose.xlu0.c.b16.cont [2/8] %v328_v53, 128  ;;  %v315_v27 = vmul.f32 %v561_v24, %v669_v8 }
 0x195   :  { %572 = vrsqrt.f32 %v293_v25 }
 0x196   :  { %v563_v11 = vpop.eup %562  ;;  %v329_v28 = vpack.c.bf16 %v316_v26, %v315_v27 }
 0x197   :  { %v565_v29 = vpop.eup %564  ;;  %v322_v6 = vmul.f32 %v563_v11, %v653_v0 }
 0x198   :  { %337 = vxpose.xlu0.c.b16.cont [3/8] %v329_v28, 128  ;;  %v321_v30 = vmul.f32 %v565_v29, %v643_v59 }
 0x19a   :  { %v567_v31 = vpop.eup %566  ;;  %v332_v32 = vpack.c.bf16 %v322_v6, %v321_v30 }
 0x19b   :  { %v569_v33 = vpop.eup %568  ;;  %v324_v34 = vmul.f32 %v567_v31, %v685_v16 }
 0x19c   :  { %338 = vxpose.xlu0.c.b16.cont [4/8] %v330_v23, 128  ;;  %v323_v14 = vmul.f32 %v569_v33, %v673_v10 }
 0x19e   :  { %v571_v35 = vpop.eup %570  ;;  %v333_v36 = vpack.c.bf16 %v324_v34, %v323_v14 }
 0x19f   :  { %v573_v8 = vpop.eup %572  ;;  %v326_v37 = vmul.f32 %v571_v35, %v679_v13 }
 0x1a0   :  { %339 = vxpose.xlu0.c.b16.cont [5/8] %v331_v9, 128  ;;  %v325_v38 = vmul.f32 %v573_v8, %v667_v7 }
 0x1a2   :  { %v334_v0 = vpack.c.bf16 %v326_v37, %v325_v38 }
 0x1a4   :  { %340 = vxpose.xlu0.c.b16.cont [6/8] %v332_v32, 128 }
 0x1a8   :  { %341 = vxpose.xlu0.c.b16.cont [7/8] %v333_v36, 128 }
 0x1ac   :  { %342 = vxpose.xlu0.c.b16.end [8/8] %v334_v0, 128 }
 0x1f6   :  { %v343_v59 = vpop.trf.xlu0 }
 0x1f7   :  { %v439_v39 = vcombine.low %v343_v59, %v343_v59  ;;  %v440_v40 = vcombine.high %v343_v59, %v343_v59 }
 0x1f9   :  { %407 = vst [vmem:[%s772_s3] sm:$0xf] %v439_v39  ;;  %408 = vst [vmem:[%s772_s3 + $0x4] sm:$0xf] %v440_v40 }
 0x1fa   :  { %v344_v10 = vpop.trf.xlu0 }
 0x1fb   :  { %v441_v13 = vcombine.low %v344_v10, %v344_v10  ;;  %v442_v16 = vcombine.high %v344_v10, %v344_v10 }
 0x1fd   :  { %409 = vst [vmem:[%s772_s3 + $0x8] sm:$0xf] %v441_v13  ;;  %410 = vst [vmem:[%s772_s3 + $0xc] sm:$0xf] %v442_v16 }
 0x1fe   :  { %v345_v7 = vpop.trf.xlu0 }
 0x1ff   :  { %v443_v41 = vcombine.low %v345_v7, %v345_v7  ;;  %v444_v42 = vcombine.high %v345_v7, %v345_v7 }
 0x201   :  { %411 = vst [vmem:[%s772_s3 + $0x10] sm:$0xf] %v443_v41  ;;  %412 = vst [vmem:[%s772_s3 + $0x14] sm:$0xf] %v444_v42 }
 0x202   :  { %v346_v43 = vpop.trf.xlu0 }
 0x203   :  { %v445_v44 = vcombine.low %v346_v43, %v346_v43  ;;  %v446_v45 = vcombine.high %v346_v43, %v346_v43 }
 0x205   :  { %413 = vst [vmem:[%s772_s3 + $0x18] sm:$0xf] %v445_v44  ;;  %414 = vst [vmem:[%s772_s3 + $0x1c] sm:$0xf] %v446_v45 }
 0x206   :  { %v347_v46 = vpop.trf.xlu0 }
 0x207   :  { %v447_v47 = vcombine.low %v347_v46, %v347_v46  ;;  %v448_v48 = vcombine.high %v347_v46, %v347_v46 }
 0x209   :  { %415 = vst [vmem:[%s772_s3 + $0x20] sm:$0xf] %v447_v47  ;;  %416 = vst [vmem:[%s772_s3 + $0x24] sm:$0xf] %v448_v48 }
 0x20a   :  { %v348_v49 = vpop.trf.xlu0 }
 0x20b   :  { %v449_v50 = vcombine.low %v348_v49, %v348_v49  ;;  %v450_v51 = vcombine.high %v348_v49, %v348_v49 }
 0x20d   :  { %417 = vst [vmem:[%s772_s3 + $0x28] sm:$0xf] %v449_v50  ;;  %418 = vst [vmem:[%s772_s3 + $0x2c] sm:$0xf] %v450_v51 }
 0x20e   :  { %v349_v52 = vpop.trf.xlu0 }
 0x20f   :  { %v451_v53 = vcombine.low %v349_v52, %v349_v52  ;;  %v452_v54 = vcombine.high %v349_v52, %v349_v52 }
 0x211   :  { %419 = vst [vmem:[%s772_s3 + $0x30] sm:$0xf] %v451_v53  ;;  %420 = vst [vmem:[%s772_s3 + $0x34] sm:$0xf] %v452_v54 }
 0x212   :  { %v350_v55 = vpop.trf.xlu0 }
 0x213   :  { %v453_v56 = vcombine.low %v350_v55, %v350_v55  ;;  %v454_v57 = vcombine.high %v350_v55, %v350_v55 }
 0x215   :  { %421 = vst [vmem:[%s772_s3 + $0x38] sm:$0xf] %v453_v56  ;;  %422 = vst [vmem:[%s772_s3 + $0x3c] sm:$0xf] %v454_v57 }

</bundles_post_ra>
